<compile_context>
chip_gen: v5e
topology: v5e:2x2
jax: 0.10.0
libtpu: 0.0.40
codegen_flags: <defaults>
</compile_context>

<pallas_src>
import functools

import jax
import jax.numpy as jnp
from jax.experimental import pallas as pl
from jax.experimental.pallas import tpu as pltpu

LANE = 128


def _cdiv(a, b):
    return -(-a // b)


def _choose_tiling(B, tile_b):
    """Balanced 128-lane-granule tiling; >=2 grid steps when B allows (v7x)."""
    lanes = _cdiv(B, LANE)                     # 128-lane groups needed
    cap = max(1, tile_b // LANE)               # requested tile in lane groups
    num_tiles = _cdiv(lanes, cap)
    if num_tiles == 1 and lanes >= 2:
        num_tiles = 2                          # give both v7x TCs work
    groups = _cdiv(lanes, num_tiles)           # balanced -> minimal padding
    tile = groups * LANE
    num_tiles = _cdiv(lanes, groups)
    return tile, num_tiles, tile * num_tiles


def _pcont_kernel(xT_ref, w1_ref, b1_ref, w2_ref, b2_ref, w3_ref, b3_ref,
                  w4_ref, b4_ref, o_ref):
    bf16, f32 = jnp.bfloat16, jnp.float32
    # All activations are [H, TILE_B]: batch on the lane / MXU-N axis.
    h = jnp.dot(w1_ref[...], xT_ref[...], preferred_element_type=f32) + b1_ref[...]
    h = jnp.maximum(h, 0.0)                                            # relu
    h = jnp.dot(w2_ref[...], h.astype(bf16), preferred_element_type=f32) + b2_ref[...]
    h = jnp.maximum(h, 0.0)
    h = jnp.dot(w3_ref[...], h.astype(bf16), preferred_element_type=f32) + b3_ref[...]
    h = jnp.maximum(h, 0.0)
    # fc4 (out_features=1): VPU multiply + sublane reduce -> lane-dense row.
    logit = jnp.sum(h * w4_ref[...], axis=0, keepdims=True) + b4_ref[0, 0]
    o_ref[...] = jax.nn.sigmoid(logit)                                 # p


@functools.partial(jax.jit, static_argnames=("tile_b",))
def pcont_forward(belief, state, params, *, tile_b=2048):
    """Pallas implementation of PCONTModel.forward.  Returns p with shape [B]."""
    w1, b1, w2, b2, w3, b3, w4, b4 = params
    B = belief.shape[0]
    F = belief.shape[1] + state.shape[1]
    H = w1.shape[0]

    TILE_B, num_tiles, B_pad = _choose_tiling(B, tile_b)

    # Lane-major activation xT[f, b]: single fused concat + transpose + bf16
    # cast in the wrapper (layout plumbing enabling the lane-dense kernel).
    # Padded lane columns are zeros and are sliced off at the end.
    xT = jnp.concatenate([belief, state], axis=1).T.astype(jnp.bfloat16)
    if B_pad != B:
        xT = jnp.pad(xT, ((0, 0), (0, B_pad - B)))

    def const_spec(shape):            # same block every step -> VMEM-resident
        return pl.BlockSpec(shape, lambda i: (0, 0))

    out = pl.pallas_call(
        _pcont_kernel,
        out_shape=jax.ShapeDtypeStruct((1, B_pad), jnp.float32),
        grid_spec=pltpu.PrefetchScalarGridSpec(
            num_scalar_prefetch=0,
            grid=(num_tiles,),
            in_specs=[
                pl.BlockSpec((F, TILE_B), lambda i: (0, i)),   # xT tile (bf16)
                const_spec((H, F)),                            # fc1 weight [out,in] (bf16)
                const_spec((H, 1)),                            # fc1 bias column (f32)
                const_spec((H, H)),                            # fc2 weight (bf16)
                const_spec((H, 1)),                            # fc2 bias
                const_spec((H, H)),                            # fc3 weight (bf16)
                const_spec((H, 1)),                            # fc3 bias
                const_spec((H, 1)),                            # fc4 weight column (f32)
                pl.BlockSpec(memory_space=pltpu.MemorySpace.SMEM),  # fc4 bias scalar
            ],
            out_specs=pl.BlockSpec((1, TILE_B), lambda i: (0, i)),
        ),
        compiler_params=pltpu.CompilerParams(
            dimension_semantics=("parallel",)),  # batch tiles are independent
    )(xT, w1, b1, w2, b2, w3, b3, w4, b4)

    return out[0, :B]                            # squeeze(dim=1), drop padding


def init_params(key, belief_size, state_size, hidden_size):
    """Parameters in the native nn.Linear [out, in] layout.

    Matmul weights are bf16 (MXU dtype); biases, the fc4 weight column and the
    fc4 bias stay f32.  w4 == fc4.weight.T as an (H, 1) column.
    """
    def uniform(k, shape, bound):
        return jax.random.uniform(k, shape, jnp.float32, -bound, bound)

    k1, kb1, k2, kb2, k3, kb3, k4, kb4 = jax.random.split(key, 8)
    F = belief_size + state_size
    bnd1, bndh = F ** -0.5, hidden_size ** -0.5

    w1 = uniform(k1, (hidden_size, F), bnd1).astype(jnp.bfloat16)
    b1 = uniform(kb1, (hidden_size, 1), bnd1)
    w2 = uniform(k2, (hidden_size, hidden_size), bndh).astype(jnp.bfloat16)
    b2 = uniform(kb2, (hidden_size, 1), bndh)
    w3 = uniform(k3, (hidden_size, hidden_size), bndh).astype(jnp.bfloat16)
    b3 = uniform(kb3, (hidden_size, 1), bndh)
    w4 = uniform(k4, (hidden_size, 1), bndh)
    b4 = uniform(kb4, (1, 1), bndh)
    return (w1, b1, w2, b2, w3, b3, w4, b4)


def ref_forward(belief, state, params):
    """Pure-JAX reference with the same bf16-input / f32-accumulate numerics."""
    w1, b1, w2, b2, w3, b3, w4, b4 = params
    bf16, f32 = jnp.bfloat16, jnp.float32
    x = jnp.concatenate([belief, state], axis=1).astype(bf16)
    h = jnp.dot(x, w1.T, preferred_element_type=f32) + b1[:, 0]
    h = jnp.maximum(h, 0.0)
    h = jnp.dot(h.astype(bf16), w2.T, preferred_element_type=f32) + b2[:, 0]
    h = jnp.maximum(h, 0.0)
    h = jnp.dot(h.astype(bf16), w3.T, preferred_element_type=f32) + b3[:, 0]
    h = jnp.maximum(h, 0.0)
    logit = h @ w4[:, 0] + b4[0, 0]
    return jax.nn.sigmoid(logit)


if __name__ == "__main__":
    belief_size, state_size, hidden_size = 32, 16, 32
    batch = 8

    key = jax.random.PRNGKey(0)
    k_params, k_belief, k_state = jax.random.split(key, 3)

    params = init_params(k_params, belief_size, state_size, hidden_size)
    belief = jax.random.normal(k_belief, (batch, belief_size), jnp.float32)
    state = jax.random.normal(k_state, (batch, state_size), jnp.float32)

    # Small single-tile run (B=8 -> one 128-lane tile).
    p = pcont_forward(belief, state, params)
    jax.block_until_ready(p)
    ref = ref_forward(belief, state, params)
    assert p.shape == (batch,)
    assert bool(jnp.all(jnp.isfinite(p)))
    assert jnp.allclose(p, ref, atol=2e-3, rtol=2e-3), (p, ref)

    # Multi-tile + lane-padding path: B=520 with tile_b=256 -> 3 tiles of 256
    # lanes (balanced tiling, >=2 grid steps for v7x megacore).
    kb2_, ks2_ = jax.random.split(jax.random.PRNGKey(1))
    belief2 = jax.random.normal(kb2_, (520, belief_size), jnp.float32)
    state2 = jax.random.normal(ks2_, (520, state_size), jnp.float32)
    p2 = pcont_forward(belief2, state2, params, tile_b=256)
    jax.block_until_ready(p2)
    ref2 = ref_forward(belief2, state2, params)
    assert p2.shape == (520,)
    assert jnp.allclose(p2, ref2, atol=2e-3, rtol=2e-3)

    print("KERNEL_OK")
</pallas_src>

<mosaic_0001>
module attributes {stable_mosaic.version = 11 : i64} {
  func.func @_pcont_kernel(%arg0: i32, %arg1: memref<48x128xbf16, #tpu.memory_space<vmem>>, %arg2: memref<32x48xbf16, #tpu.memory_space<vmem>>, %arg3: memref<32x1xf32, #tpu.memory_space<vmem>>, %arg4: memref<32x32xbf16, #tpu.memory_space<vmem>>, %arg5: memref<32x1xf32, #tpu.memory_space<vmem>>, %arg6: memref<32x32xbf16, #tpu.memory_space<vmem>>, %arg7: memref<32x1xf32, #tpu.memory_space<vmem>>, %arg8: memref<32x1xf32, #tpu.memory_space<vmem>>, %arg9: memref<1x1xf32, #tpu.memory_space<smem>>, %arg10: memref<1x128xf32, #tpu.memory_space<vmem>>) attributes {dimension_semantics = [#tpu.dimension_semantics<parallel>], iteration_bounds = array<i64: 1>, scalar_prefetch = 0 : i64, scratch_operands = 0 : i64, tpu.core_type = #tpu.core_type<tc>, window_params = [{transform_indices = @transform_0, window_bounds = array<i64: 48, 128>}, {pipeline_mode = #tpu.pipeline_mode<synchronous>, transform_indices = @transform_1, window_bounds = array<i64: 32, 48>}, {pipeline_mode = #tpu.pipeline_mode<synchronous>, transform_indices = @transform_2, window_bounds = array<i64: 32, 1>}, {pipeline_mode = #tpu.pipeline_mode<synchronous>, transform_indices = @transform_3, window_bounds = array<i64: 32, 32>}, {pipeline_mode = #tpu.pipeline_mode<synchronous>, transform_indices = @transform_4, window_bounds = array<i64: 32, 1>}, {pipeline_mode = #tpu.pipeline_mode<synchronous>, transform_indices = @transform_5, window_bounds = array<i64: 32, 32>}, {pipeline_mode = #tpu.pipeline_mode<synchronous>, transform_indices = @transform_6, window_bounds = array<i64: 32, 1>}, {pipeline_mode = #tpu.pipeline_mode<synchronous>, transform_indices = @transform_7, window_bounds = array<i64: 32, 1>}, {transform_indices = @transform_8, window_bounds = array<i64: 1, 1>}, {transform_indices = @transform_9, window_bounds = array<i64: 1, 128>}]} {
    %c0 = arith.constant 0 : index
    %c0_0 = arith.constant 0 : index
    %0 = vector.load %arg2[%c0, %c0_0] : memref<32x48xbf16, #tpu.memory_space<vmem>>, vector<32x48xbf16>
    %c0_1 = arith.constant 0 : index
    %c0_2 = arith.constant 0 : index
    %1 = vector.load %arg1[%c0_1, %c0_2] : memref<48x128xbf16, #tpu.memory_space<vmem>>, vector<48x128xbf16>
    %cst = arith.constant dense<0.000000e+00> : vector<32x128xf32>
    %2 = tpu.matmul %0, %1, %cst {dimension_numbers = #tpu.dot_dimension_numbers<[1], [0], [0], [1], [0, 0, 1, 1], [], []>} : vector<32x48xbf16>, vector<48x128xbf16>, vector<32x128xf32> -> vector<32x128xf32>
    %c0_3 = arith.constant 0 : index
    %c0_4 = arith.constant 0 : index
    %3 = vector.load %arg3[%c0_3, %c0_4] : memref<32x1xf32, #tpu.memory_space<vmem>>, vector<32x1xf32>
    %4 = vector.broadcast %3 : vector<32x1xf32> to vector<32x128xf32>
    %5 = arith.addf %2, %4 : vector<32x128xf32>
    %cst_5 = arith.constant 0.000000e+00 : f32
    %6 = vector.broadcast %cst_5 : f32 to vector<32x128xf32>
    %7 = arith.maximumf %5, %6 : vector<32x128xf32>
    %c0_6 = arith.constant 0 : index
    %c0_7 = arith.constant 0 : index
    %8 = vector.load %arg4[%c0_6, %c0_7] : memref<32x32xbf16, #tpu.memory_space<vmem>>, vector<32x32xbf16>
    %9 = arith.truncf %7 : vector<32x128xf32> to vector<32x128xbf16>
    %cst_8 = arith.constant dense<0.000000e+00> : vector<32x128xf32>
    %10 = tpu.matmul %8, %9, %cst_8 {dimension_numbers = #tpu.dot_dimension_numbers<[1], [0], [0], [1], [0, 0, 1, 1], [], []>} : vector<32x32xbf16>, vector<32x128xbf16>, vector<32x128xf32> -> vector<32x128xf32>
    %c0_9 = arith.constant 0 : index
    %c0_10 = arith.constant 0 : index
    %11 = vector.load %arg5[%c0_9, %c0_10] : memref<32x1xf32, #tpu.memory_space<vmem>>, vector<32x1xf32>
    %12 = vector.broadcast %11 : vector<32x1xf32> to vector<32x128xf32>
    %13 = arith.addf %10, %12 : vector<32x128xf32>
    %cst_11 = arith.constant 0.000000e+00 : f32
    %14 = vector.broadcast %cst_11 : f32 to vector<32x128xf32>
    %15 = arith.maximumf %13, %14 : vector<32x128xf32>
    %c0_12 = arith.constant 0 : index
    %c0_13 = arith.constant 0 : index
    %16 = vector.load %arg6[%c0_12, %c0_13] : memref<32x32xbf16, #tpu.memory_space<vmem>>, vector<32x32xbf16>
    %17 = arith.truncf %15 : vector<32x128xf32> to vector<32x128xbf16>
    %cst_14 = arith.constant dense<0.000000e+00> : vector<32x128xf32>
    %18 = tpu.matmul %16, %17, %cst_14 {dimension_numbers = #tpu.dot_dimension_numbers<[1], [0], [0], [1], [0, 0, 1, 1], [], []>} : vector<32x32xbf16>, vector<32x128xbf16>, vector<32x128xf32> -> vector<32x128xf32>
    %c0_15 = arith.constant 0 : index
    %c0_16 = arith.constant 0 : index
    %19 = vector.load %arg7[%c0_15, %c0_16] : memref<32x1xf32, #tpu.memory_space<vmem>>, vector<32x1xf32>
    %20 = vector.broadcast %19 : vector<32x1xf32> to vector<32x128xf32>
    %21 = arith.addf %18, %20 : vector<32x128xf32>
    %cst_17 = arith.constant 0.000000e+00 : f32
    %22 = vector.broadcast %cst_17 : f32 to vector<32x128xf32>
    %23 = arith.maximumf %21, %22 : vector<32x128xf32>
    %c0_18 = arith.constant 0 : index
    %c0_19 = arith.constant 0 : index
    %24 = vector.load %arg8[%c0_18, %c0_19] : memref<32x1xf32, #tpu.memory_space<vmem>>, vector<32x1xf32>
    %25 = vector.broadcast %24 : vector<32x1xf32> to vector<32x128xf32>
    %26 = arith.mulf %23, %25 : vector<32x128xf32>
    %cst_20 = arith.constant dense<0.000000e+00> : vector<128xf32>
    %27 = vector.multi_reduction <add>, %26, %cst_20 [0] : vector<32x128xf32> to vector<128xf32>
    %28 = vector.shape_cast %27 : vector<128xf32> to vector<1x128xf32>
    %c0_21 = arith.constant 0 : index
    %c0_22 = arith.constant 0 : index
    %29 = memref.load %arg9[%c0_21, %c0_22] : memref<1x1xf32, #tpu.memory_space<smem>>
    %30 = vector.broadcast %29 : f32 to vector<1x128xf32>
    %31 = arith.addf %28, %30 : vector<1x128xf32>
    %32 = arith.negf %31 : vector<1x128xf32>
    %33 = math.exp %32 : vector<1x128xf32>
    %cst_23 = arith.constant 1.000000e+00 : f32
    %34 = vector.broadcast %cst_23 : f32 to vector<1x128xf32>
    %35 = arith.addf %34, %33 : vector<1x128xf32>
    %36 = arith.divf %34, %35 : vector<1x128xf32>
    %c0_24 = arith.constant 0 : index
    %c0_25 = arith.constant 0 : index
    %37 = vector.load %arg10[%c0_24, %c0_25] : memref<1x128xf32, #tpu.memory_space<vmem>>, vector<1x128xf32>
    tpu.vector_store %arg10[%c0_24, %c0_25], %36 {strides = array<i32>} : memref<1x128xf32, #tpu.memory_space<vmem>>, vector<1x128xf32>,
    return
  }
  func.func @transform_0(%arg0: i32) -> (i32, i32) {
    %c0_i32 = arith.constant 0 : i32
    %c0_i32_0 = arith.constant 0 : i32
    return %c0_i32, %arg0 : i32, i32
  }
  func.func @transform_1(%arg0: i32) -> (i32, i32) {
    %c0_i32 = arith.constant 0 : i32
    %c0_i32_0 = arith.constant 0 : i32
    %c0_i32_1 = arith.constant 0 : i32
    return %c0_i32, %c0_i32_0 : i32, i32
  }
  func.func @transform_2(%arg0: i32) -> (i32, i32) {
    %c0_i32 = arith.constant 0 : i32
    %c0_i32_0 = arith.constant 0 : i32
    %c0_i32_1 = arith.constant 0 : i32
    return %c0_i32, %c0_i32_0 : i32, i32
  }
  func.func @transform_3(%arg0: i32) -> (i32, i32) {
    %c0_i32 = arith.constant 0 : i32
    %c0_i32_0 = arith.constant 0 : i32
    %c0_i32_1 = arith.constant 0 : i32
    return %c0_i32, %c0_i32_0 : i32, i32
  }
  func.func @transform_4(%arg0: i32) -> (i32, i32) {
    %c0_i32 = arith.constant 0 : i32
    %c0_i32_0 = arith.constant 0 : i32
    %c0_i32_1 = arith.constant 0 : i32
    return %c0_i32, %c0_i32_0 : i32, i32
  }
  func.func @transform_5(%arg0: i32) -> (i32, i32) {
    %c0_i32 = arith.constant 0 : i32
    %c0_i32_0 = arith.constant 0 : i32
    %c0_i32_1 = arith.constant 0 : i32
    return %c0_i32, %c0_i32_0 : i32, i32
  }
  func.func @transform_6(%arg0: i32) -> (i32, i32) {
    %c0_i32 = arith.constant 0 : i32
    %c0_i32_0 = arith.constant 0 : i32
    %c0_i32_1 = arith.constant 0 : i32
    return %c0_i32, %c0_i32_0 : i32, i32
  }
  func.func @transform_7(%arg0: i32) -> (i32, i32) {
    %c0_i32 = arith.constant 0 : i32
    %c0_i32_0 = arith.constant 0 : i32
    %c0_i32_1 = arith.constant 0 : i32
    return %c0_i32, %c0_i32_0 : i32, i32
  }
  func.func @transform_8(%arg0: i32) -> (i32, i32) {
    %c0_i32 = arith.constant 0 : i32
    %c0_i32_0 = arith.constant 0 : i32
    %c0_i32_1 = arith.constant 0 : i32
    return %c0_i32, %c0_i32_0 : i32, i32
  }
  func.func @transform_9(%arg0: i32) -> (i32, i32) {
    %c0_i32 = arith.constant 0 : i32
    %c0_i32_0 = arith.constant 0 : i32
    return %c0_i32, %arg0 : i32, i32
  }
}

</mosaic_0001>

<bundles_post_ra>
// kernel: pcont_forward.1
= control target key start
LH: loop header
LB: loop body
LE: loop exit
PB: predicated region body
PF: predicated region fallthrough
CT: control target
= control target key end

     0   :  { %v392_v0 = vmov 0   ;;  %vm96_vm0 = vcmask 392192   ;;  %vm166_vm1 = vcmask 261120   ;;  %s528_s2 = inlined_call_operand.vmem [shape: f32[32,1], index: 2, kind: input, shape index: {}]   ;;  %s529_s0 = inlined_call_operand.vmem [shape: bf16[48,128], index: 0, kind: input, shape index: {}]   ;;  %s530_s1 = inlined_call_operand.vmem [shape: bf16[32,48], index: 1, kind: input, shape index: {}]   ;;  %s531_s4 = inlined_call_operand.vmem [shape: f32[32,1], index: 4, kind: input, shape index: {}]   ;;  %s532_s6 = inlined_call_operand.vmem [shape: f32[32,1], index: 6, kind: input, shape index: {}]   ;;  %s533_s7 = inlined_call_operand.vmem [shape: f32[32,1], index: 7, kind: input, shape index: {}]   ;;  %s534_s3 = inlined_call_operand.vmem [shape: bf16[32,32], index: 3, kind: input, shape index: {}]   ;;  %s535_s5 = inlined_call_operand.vmem [shape: bf16[32,32], index: 5, kind: input, shape index: {}]   ;;  %s536_s8 = inlined_call_operand.<no memory space> [shape: f32[1,1], index: 8, kind: input, shape index: {}]   ;;  %s537_s9 = inlined_call_operand.vmem [shape: f32[1,128], index: 9, kind: output, shape index: {}]  }
   0x1   :  { %385 = vset.pattern.permute.xlu0 %v392_v0  ;;  %v46_v1 = vld [vmem:[%s528_s2 + $0x10] sm:$0xff]  ;;  %386 = vset.pattern.permute.xlu1 %v392_v0  ;;  %v44_v2 = vld [vmem:[%s528_s2] sm:$0xff]  ;;  %v375_v4 = vld [vmem:[%s529_s0 + $0x8] sm:$0xff] }
   0x2   :  { %v376_v3 = vld [vmem:[%s529_s0 + $0x10] sm:$0xff]  ;;  %60 = vperm.xlu0 %385, %v46_v1   ;;  %50 = vperm.xlu1 %386, %v44_v2   ;;  %v47_v5 = vld [vmem:[%s528_s2 + $0x18] sm:$0xff]  ;;  %v45_v6 = vld [vmem:[%s528_s2 + $0x8] sm:$0xff] }
   0x3   :  { %381 = vmatpush.bf16.msra.mxu3 %v376_v3  ;;  %108 = vmatpush.bf16.msra.mxu0 %v376_v3  ;;  %v374_v7 = vld [vmem:[%s529_s0] sm:$0xff]  ;;  %v373_v8 = vld [vmem:[%s530_s1 + $0x8] sm:$0xff]  ;;  %v204_v13 = vld [vmem:[%s532_s6 + $0x10] sm:$0xff] }
   0x4   :  { %387 = vset.pattern.permute.xlu2 %v392_v0  ;;  %v372_v9 = vld [vmem:[%s530_s1] sm:$0xff]  ;;  %v133_v11 = vld [vmem:[%s531_s4 + $0x8] sm:$0xff]  ;;  %v268_v16 = vld [vmem:[%s533_s7 + $0x18] sm:$0xff] }
   0x5   :  { %v132_v10 = vld [vmem:[%s531_s4] sm:$0xff]  ;;  %v203_v12 = vld [vmem:[%s532_s6 + $0x8] sm:$0xff]  ;;  %v134_v22 = vld [vmem:[%s531_s4 + $0x10] sm:$0xff] }
   0x6   :  { %v265_v14 = vld [vmem:[%s533_s7] sm:$0xff]  ;;  %v266_v15 = vld [vmem:[%s533_s7 + $0x8] sm:$0xff]  ;;  %148 = vperm.xlu2 %387, %v134_v22   ;;  %v135_v32 = vld [vmem:[%s531_s4 + $0x18] sm:$0xff] }
   0x7   :  { %382 = vmatpush.bf16.msra.mxu3 %v375_v4  ;;  %109 = vmatpush.bf16.msra.mxu0 %v375_v4  ;;  %v377_v37 = vld [vmem:[%s534_s3] sm:$0xff]  ;;  %v205_v39 = vld [vmem:[%s532_s6 + $0x18] sm:$0xff]  ;;  %v378_v40 = vld [vmem:[%s534_s3 + $0x8] sm:$0xff] }
   0x8   :  { %v202_v38 = vld [vmem:[%s532_s6] sm:$0xff]  ;;  %v267_v41 = vld [vmem:[%s533_s7 + $0x10] sm:$0xff]  ;;  %v380_v61 = vld [vmem:[%s535_s5 + $0x8] sm:$0xff] }
   0x9   :  { %v379_v60 = vld [vmem:[%s535_s5] sm:$0xff] }
   0xa   :  { %65 = vperm.xlu0 %385, %v47_v5   ;;  %55 = vperm.xlu1 %386, %v45_v6  }
   0xb   :  { %383 = vmatpush.bf16.msra.mxu3 %v374_v7  ;;  %110 = vmatpush.bf16.msra.mxu0 %v374_v7 }
   0xe   :  { %350 = vmatmul.msk.bf16.vlgmr.msra.gmra.mxu3 %vm96_vm0, %v373_v8  ;;  %349 = vmatmul.msk.bf16.vlgmr.msra.gmra.mxu0 %vm96_vm0, %v372_v9 }
   0xf   :  { %153 = vperm.xlu2 %387, %v135_v32  }
  0x12   :  { %138 = vperm.xlu0 %385, %v132_v10   ;;  %143 = vperm.xlu1 %386, %v133_v11  }
  0x17   :  { %208 = vperm.xlu2 %387, %v202_v38  }
  0x1a   :  { %213 = vperm.xlu0 %385, %v203_v12   ;;  %218 = vperm.xlu1 %386, %v204_v13  }
  0x1f   :  { %223 = vperm.xlu2 %387, %v205_v39  }
  0x22   :  { %271 = vperm.xlu0 %385, %v265_v14   ;;  %276 = vperm.xlu1 %386, %v266_v15  }
  0x27   :  { %281 = vperm.xlu2 %387, %v267_v41  }
  0x2a   :  { %286 = vperm.xlu0 %385, %v268_v16  }
  0x60   :  { %v149_v44 = vpop.permute.xlu2 %148 }
  0x69   :  { %v154_v48 = vpop.permute.xlu2 %153 }
  0x71   :  { %v209_v63 = vpop.permute.xlu2 %208 }
  0x74   :  { %v61_v18 = vpop.permute.xlu0 %60  ;;  %v51_v19 = vpop.permute.xlu1 %50 }
  0x79   :  { %v224_v3 = vpop.permute.xlu2 %223 }
  0x7c   :  { %v66_v23 = vpop.permute.xlu0 %65  ;;  %v56_v25 = vpop.permute.xlu1 %55 }
  0x81   :  { %v282_v14 = vpop.permute.xlu2 %281 }
  0x84   :  { %v144_v46 = vpop.permute.xlu1 %143  ;;  %v139_v52 = vpop.permute.xlu0 %138 }
  0x8b   :  { %v112_v17 = vpop.f32.mrf.mxu0 }
  0x8c   :  { %v113_v27 = vadd.f32 %v112_v17, %v51_v19  ;;  %v214_v0 = vpop.permute.xlu0 %213  ;;  %v219_v2 = vpop.permute.xlu1 %218 }
  0x8e   :  { %v122_v33 = vmax.f32 %v113_v27, 0.0 }
  0x91   :  { %v117_v20 = vpop.f32.mrf.mxu3 }
  0x92   :  { %v118_v24 = vadd.f32 %v117_v20, %v61_v18 }
  0x93   :  { %v114_v21 = vpop.f32.mrf.mxu0 }
  0x94   :  { %v115_v28 = vadd.f32 %v114_v21, %v56_v25  ;;  %v124_v30 = vmax.f32 %v118_v24, 0.0  ;;  %v272_v8 = vpop.permute.xlu0 %271  ;;  %v277_v12 = vpop.permute.xlu1 %276 }
  0x96   :  { %v123_v34 = vmax.f32 %v115_v28, 0.0 }
  0x98   :  { %v130_v36 = vpack.c.bf16 %v123_v34, %v122_v33 }
  0x99   :  { %v119_v26 = vpop.f32.mrf.mxu3 }
  0x9a   :  { %v120_v29 = vadd.f32 %v119_v26, %v66_v23 }
  0x9c   :  { %v125_v31 = vmax.f32 %v120_v29, 0.0  ;;  %v287_v21 = vpop.permute.xlu0 %286 }
  0x9e   :  { %v131_v35 = vpack.c.bf16 %v125_v31, %v124_v30  ;;  %v303_v30 = vstv %s536_s8 }
  0xa0   :  { %179 = vmatpush.bf16.msra.mxu1 %v131_v35 }
  0xa4   :  { %180 = vmatpush.bf16.msra.mxu1 %v130_v36 }
  0xa7   :  { %359 = vmatmul.msk.bf16.vlgmr.msra.gmra.mxu1 %vm166_vm1, %v377_v37 }
  0xb7   :  { %360 = vmatmul.msk.bf16.gmra.mxu1 %vm166_vm1, %v378_v40 }
 0x124   :  { %v182_v42 = vpop.f32.mrf.mxu1 }
 0x125   :  { %v183_v53 = vadd.f32 %v182_v42, %v139_v52 }
 0x127   :  { %v192_v58 = vmax.f32 %v183_v53, 0.0 }
 0x12c   :  { %v184_v43 = vpop.f32.mrf.mxu1 }
 0x12d   :  { %v185_v50 = vadd.f32 %v184_v43, %v144_v46 }
 0x12f   :  { %v193_v56 = vmax.f32 %v185_v50, 0.0 }
 0x131   :  { %v200_v59 = vpack.c.bf16 %v193_v56, %v192_v58 }
 0x134   :  { %v187_v45 = vpop.f32.mrf.mxu1 }
 0x135   :  { %v188_v47 = vadd.f32 %v187_v45, %v149_v44 }
 0x137   :  { %v194_v54 = vmax.f32 %v188_v47, 0.0 }
 0x13c   :  { %v189_v49 = vpop.f32.mrf.mxu1 }
 0x13d   :  { %v190_v51 = vadd.f32 %v189_v49, %v154_v48 }
 0x13f   :  { %v195_v55 = vmax.f32 %v190_v51, 0.0 }
 0x141   :  { %v201_v57 = vpack.c.bf16 %v195_v55, %v194_v54 }
 0x143   :  { %248 = vmatpush.bf16.msra.mxu2 %v201_v57 }
 0x147   :  { %249 = vmatpush.bf16.msra.mxu2 %v200_v59 }
 0x14a   :  { %369 = vmatmul.msk.bf16.vlgmr.msra.gmra.mxu2 %vm166_vm1, %v379_v60 }
 0x15a   :  { %370 = vmatmul.msk.bf16.gmra.mxu2 %vm166_vm1, %v380_v61 }
 0x1cd   :  { %v251_v62 = vpop.f32.mrf.mxu2 }
 0x1ce   :  { %v252_v6 = vadd.f32 %v251_v62, %v209_v63 }
 0x1d0   :  { %v261_v10 = vmax.f32 %v252_v6, 0.0 }
 0x1d2   :  { %v289_v16 = vmul.f32 %v272_v8, %v261_v10 }
 0x1d5   :  { %v253_v1 = vpop.f32.mrf.mxu2 }
 0x1d6   :  { %v254_v4 = vadd.f32 %v253_v1, %v214_v0 }
 0x1d8   :  { %v262_v9 = vmax.f32 %v254_v4, 0.0 }
 0x1da   :  { %v290_v13 = vmul.f32 %v277_v12, %v262_v9 }
 0x1dc   :  { %v293_v19 = vadd.f32 %v290_v13, %v289_v16 }
 0x1dd   :  { %v256_v5 = vpop.f32.mrf.mxu2 }
 0x1de   :  { %v257_v7 = vadd.f32 %v256_v5, %v219_v2 }
 0x1e0   :  { %v263_v11 = vmax.f32 %v257_v7, 0.0 }
 0x1e2   :  { %v291_v17 = vmul.f32 %v282_v14, %v263_v11 }
 0x1e4   :  { %v294_v22 = vadd.f32 %v293_v19, %v291_v17 }
 0x1e5   :  { %v258_v15 = vpop.f32.mrf.mxu2 }
 0x1e6   :  { %v259_v18 = vadd.f32 %v258_v15, %v224_v3 }
 0x1e8   :  { %v264_v20 = vmax.f32 %v259_v18, 0.0 }
 0x1ea   :  { %v292_v23 = vmul.f32 %v287_v21, %v264_v20 }
 0x1ec   :  { %v295_v24 = vadd.f32 %v294_v22, %v292_v23 }
 0x1ee   :  { %v296_v25 = vrot.slane %v295_v24, 4 }
 0x1f0   :  { %v297_v26 = vadd.f32 %v296_v25, %v295_v24 }
 0x1f2   :  { %v298_v27 = vrot.slane %v297_v26, 2 }
 0x1f4   :  { %v299_v28 = vadd.f32 %v298_v27, %v297_v26 }
 0x1f6   :  { %v300_v29 = vrot.slane %v299_v28, 1 }
 0x1f8   :  { %v301_v31 = vadd.f32 %v300_v29, %v299_v28 }
 0x1fa   :  { %v304_v32 = vadd.f32 %v303_v30, %v301_v31 }
 0x1fc   :  { %v371_v33 = vmul.f32 -1.442695, %v304_v32 }
 0x1fe   :  { %388 = vpow2.f32 %v371_v33 }
 0x204   :  { %v389_v34 = vpop.eup %388 }
 0x205   :  { %v308_v35 = vadd.f32 1.0, %v389_v34 }
 0x207   :  { %390 = vrcp.f32 %v308_v35  ;;  %v320_v39 = vand.u32 2147483648, %v308_v35  ;;  %v318_v41 = vand.u32 2147483647, %v308_v35  ;;  %vm314_vm3 = vweird.f32 %v308_v35 }
 0x209   :  { %v321_v43 = vor.u32 1.1754944e-38, %v320_v39  ;;  %vm319_vm5 = vcmp.eq.f32.partialorder %v318_v41, 8.507059e+37 }
 0x20d   :  { %v391_v36 = vpop.eup %390 }
 0x20e   :  { %v310_v37 = vmul.f32 %v391_v36, %v308_v35  ;;  %vm315_vm2 = vweird.f32 %v391_v36 }
 0x20f   :  { %vm316_vm4 = vmor %vm314_vm3, %vm315_vm2 }
 0x210   :  { %v311_v38 = vsub.f32 1.0, %v310_v37 }
 0x212   :  { %v312_v40 = vmul.f32 %v391_v36, %v311_v38 }
 0x214   :  { %v313_v42 = vadd.f32 %v391_v36, %v312_v40 }
 0x216   :  { %v317_v44 = vsel %vm316_vm4, %v391_v36, %v313_v42 }
 0x217   :  { %v322_v45 = vsel %vm319_vm5, %v321_v43, %v317_v44 }
 0x218   :  { %324 = vst [vmem:[%s537_s9] sm:$0x1] %v322_v45 }

</bundles_post_ra>
